<compile_context>
chip_gen: v7x
topology: tpu7x:2x2x1
jax: 0.10.0
libtpu: 0.0.40
codegen_flags: <defaults>
</compile_context>

<pallas_src>
import functools

import jax
import jax.numpy as jnp
from jax.experimental import pallas as pl
from jax.experimental.pallas import tpu as pltpu

DELTA = 0.7
GAMMA = 2.0
_EPS = 1e-7


def _pow_int(x, n):
    """x ** n for small non-negative integer n via a VPU multiply chain."""
    if n == 0:
        return jnp.ones_like(x)
    r = x
    for _ in range(n - 1):
        r = r * x
    return r


def _round_up(x, m):
    return ((x + m - 1) // m) * m


def _device_kind():
    try:
        return jax.devices()[0].device_kind.lower().replace(" ", "")
    except Exception:
        return ""


def _num_tensorcores(kind):
    # 2 TensorCores per chip on v7x, and on megacore chips (v4 / v5p).
    if "v7" in kind:
        return 2
    if ("v4" in kind and "lite" not in kind) or "v5p" in kind:
        return 2
    return 1


def _vmem_capacity_bytes():
    try:
        return int(pltpu.get_tpu_info().vmem_capacity_bytes)
    except Exception:
        return 64 << 20  # conservative (v7x per-core)


def _sfl_kernel(yp_ref, yt_ref, out_ref, acc_ref, *, delta, gamma,
                rows_total, tile_rows, blocks_per_core):
    """One grid step over a (tile_rows, L) slab of interleaved channels.

    Even lanes carry the background channel, odd lanes the foreground channel.
    Per-step work: elementwise chain + one sublane reduce into a (1, L)
    accumulator.  Class weights and the cross-lane reduce run only in the
    epilogue; row masking only on the ragged / overrun block.
    """
    j = pl.program_id(1)

    @pl.when(j == 0)
    def _init():
        acc_ref[...] = jnp.zeros_like(acc_ref)

    def contrib():
        yp = yp_ref[...].astype(jnp.float32)
        yt = yt_ref[...].astype(jnp.float32)
        eps = jnp.float32(_EPS)
        ypc = jnp.clip(yp, eps, 1.0 - eps)
        ce = -yt * jnp.log(ypc)                 # elementwise cross-entropy
        one_m = 1.0 - ypc
        g = float(gamma)
        if g == int(g) and 0 <= int(g) <= 8:    # gamma=2 -> x*x (no pow/EUP)
            w = _pow_int(one_m, int(g))
        else:
            w = one_m ** jnp.float32(g)
        return w * ce

    block_idx = pl.program_id(0) * blocks_per_core + j
    row_base = block_idx * tile_rows
    interior = row_base + tile_rows <= rows_total

    @pl.when(interior)
    def _fast():
        # Fast path: no iota / compare / select at all.
        acc_ref[...] += jnp.sum(contrib(), axis=0, keepdims=True)

    @pl.when(jnp.logical_not(interior))
    def _tail():
        # Ragged tail or clamped-overrun block: one select on the contribution.
        row_ids = row_base + jax.lax.broadcasted_iota(jnp.int32,
                                                      yp_ref.shape, 0)
        masked = jnp.where(row_ids < rows_total, contrib(), jnp.float32(0.0))
        acc_ref[...] += jnp.sum(masked, axis=0, keepdims=True)

    @pl.when(j == pl.num_programs(1) - 1)
    def _fin():
        # Channel weights via lane parity, applied once to the (1, L) vector.
        lane = jax.lax.broadcasted_iota(jnp.int32, acc_ref.shape, 1)
        cls_w = jnp.where((lane & 1) == 0,
                          jnp.float32(1.0 - delta), jnp.float32(delta))
        out_ref[0, 0] = jnp.sum(cls_w * acc_ref[...])


def symmetric_focal_loss(y_pred, y_true, delta=DELTA, gamma=GAMMA,
                         target_block_bytes=None, num_parallel=None):
    """y_pred, y_true: (N, H, W, 2) probability / one-hot arrays (f32 or bf16)."""
    N, H, W, C = y_pred.shape
    assert C == 2, "symmetric_focal_loss expects exactly 2 classes"
    total = N * H * W * C
    M = N * H * W                      # pixel count for the mean

    kind = _device_kind()
    if target_block_bytes is None:
        # v6e: big blocks + 1.4 TB/s HBM; v5e / v7x: keep ~2 MiB per block.
        target_block_bytes = (4 << 20) if "v6" in kind else (2 << 20)
    if num_parallel is None:
        num_parallel = _num_tensorcores(kind)

    # ---- lane-dense flat layout -------------------------------------------
    # C=2 is innermost, so with an even lane width L: channel == lane & 1.
    Wc = W * C
    L = None
    pad = 0
    for cand in (2048, 1024, 512, 256):
        if total % cand == 0:
            L = cand
            break
    if L is None:
        if Wc % 128 == 0:
            L = Wc                                  # already lane-dense rows
        else:
            L = 1024                                # pad one partial row
            pad = (-total) % L

    yp = y_pred.reshape(-1)
    yt = y_true.reshape(-1)
    if pad:
        # padded y_true == 0 -> ce == 0 -> zero contribution (y_pred pad is
        # clipped to eps, so no NaN/Inf can appear).
        yp = jnp.pad(yp, (0, pad))
        yt = jnp.pad(yt, (0, pad))
    rows = (total + pad) // L
    yp = yp.reshape(rows, L)
    yt = yt.reshape(rows, L)

    itemsize = max(jnp.dtype(y_pred.dtype).itemsize,
                   jnp.dtype(y_true.dtype).itemsize)

    vmem_cap = _vmem_capacity_bytes()
    target_block_bytes = min(int(target_block_bytes), int(vmem_cap * 0.15))

    # Rows per block: multiple of 8, ~target bytes per input block.
    tr = target_block_bytes // (L * itemsize)
    tr = max(8, (tr // 8) * 8)
    tr = min(tr, _round_up(rows, 8))

    total_blocks = pl.cdiv(rows, tr)
    P = max(1, min(int(num_parallel), total_blocks))   # megacore split
    if P > 1 and total_blocks % P != 0:
        # Balance the cores exactly (avoid a duplicated, fully-masked block)
        # by shrinking tile rows slightly if a clean split exists.
        for cand in range(tr - 8, 7, -8):
            nb = pl.cdiv(rows, cand)
            if nb % P == 0:
                tr, total_blocks = cand, nb
                break
    TB = pl.cdiv(total_blocks, P)                      # row-blocks per core

    block_bytes = tr * L * itemsize
    vmem_needed = 4 * block_bytes + 8 * L * 4 + (2 << 20)
    vmem_limit = int(min(max(32 << 20, int(vmem_needed * 1.25)),
                         int(vmem_cap * 0.8)))

    def in_map(c, j):
        # Clamp overrun steps (when P*TB > total_blocks) onto the last valid
        # block; the kernel's tail path zeroes their contribution.
        return (jnp.minimum(c * TB + j, total_blocks - 1), 0)

    kernel = functools.partial(
        _sfl_kernel, delta=float(delta), gamma=float(gamma),
        rows_total=rows, tile_rows=tr, blocks_per_core=TB)

    partial_sums = pl.pallas_call(
        kernel,
        out_shape=jax.ShapeDtypeStruct((P, 1), jnp.float32),
        grid_spec=pltpu.PrefetchScalarGridSpec(
            num_scalar_prefetch=0,
            grid=(P, TB),
            in_specs=[
                pl.BlockSpec((tr, L), in_map),
                pl.BlockSpec((tr, L), in_map),
            ],
            out_specs=pl.BlockSpec((1, 1), lambda c, j: (c, 0),
                                   memory_space=pltpu.SMEM),
            scratch_shapes=[pltpu.VMEM((1, L), jnp.float32)],
        ),
        compiler_params=pltpu.CompilerParams(
            dimension_semantics=("parallel", "arbitrary"),
            vmem_limit_bytes=vmem_limit),
    )(yp, yt)

    return jnp.sum(partial_sums) / jnp.float32(M)


def _reference(y_pred, y_true, delta=DELTA, gamma=GAMMA):
    ypc = jnp.clip(y_pred.astype(jnp.float32), _EPS, 1.0 - _EPS)
    ce = -y_true.astype(jnp.float32) * jnp.log(ypc)
    back = (1.0 - delta) * (1.0 - ypc[..., 0]) ** gamma * ce[..., 0]
    fore = delta * (1.0 - ypc[..., 1]) ** gamma * ce[..., 1]
    return jnp.mean(back + fore)


def _make_inputs(key, shape):
    k1, k2 = jax.random.split(key)
    N, H, W, C = shape
    logits = jax.random.normal(k1, (N, H, W, C), dtype=jnp.float32)
    y_pred = jax.nn.softmax(logits, axis=-1)                     # probabilities
    labels = jax.random.bernoulli(k2, 0.5, (N, H, W)).astype(jnp.int32)
    y_true = jax.nn.one_hot(labels, C, dtype=jnp.float32)        # one-hot
    return y_pred, y_true


if __name__ == "__main__":
    key = jax.random.PRNGKey(0)
    ka, kb, kc, kd = jax.random.split(key, 4)

    # Test 1: small NHWC -> lane-dense (1, 1024) layout, single ragged block.
    y_pred, y_true = _make_inputs(ka, (2, 16, 16, 2))
    loss = jax.block_until_ready(symmetric_focal_loss(y_pred, y_true))
    ref = _reference(y_pred, y_true)
    assert jnp.allclose(loss, ref, rtol=1e-5, atol=1e-6), (float(loss), float(ref))

    # Test 2: multiple blocks per core, forced 2-way parallel split with
    # overrun clamping -> exercises interior fast path + masked overrun block.
    y_pred2, y_true2 = _make_inputs(kb, (4, 80, 64, 2))
    loss2 = jax.block_until_ready(
        symmetric_focal_loss(y_pred2, y_true2,
                             target_block_bytes=64 * 1024, num_parallel=2))
    ref2 = _reference(y_pred2, y_true2)
    assert jnp.allclose(loss2, ref2, rtol=1e-5, atol=1e-6), (float(loss2), float(ref2))

    # Test 3: tiny ragged shape -> padded lane-dense layout, rows < 8.
    y_pred3, y_true3 = _make_inputs(kc, (1, 3, 5, 2))
    loss3 = jax.block_until_ready(symmetric_focal_loss(y_pred3, y_true3))
    ref3 = _reference(y_pred3, y_true3)
    assert jnp.allclose(loss3, ref3, rtol=1e-5, atol=1e-6), (float(loss3), float(ref3))

    # Test 4: Wc-multiple-of-128 fallback branch (no pad), rows not mult of 8.
    y_pred4, y_true4 = _make_inputs(kd, (1, 5, 64, 2))
    loss4 = jax.block_until_ready(symmetric_focal_loss(y_pred4, y_true4))
    ref4 = _reference(y_pred4, y_true4)
    assert jnp.allclose(loss4, ref4, rtol=1e-5, atol=1e-6), (float(loss4), float(ref4))

    print("KERNEL_OK")
</pallas_src>

<mosaic_0001>
module attributes {stable_mosaic.version = 11 : i64} {
  func.func @_sfl_kernel(%arg0: i32, %arg1: i32, %arg2: memref<8x1024xf32, #tpu.memory_space<vmem>>, %arg3: memref<8x1024xf32, #tpu.memory_space<vmem>>, %arg4: memref<1x1xf32, #tpu.memory_space<smem>>, %arg5: memref<1x1024xf32, #tpu.memory_space<vmem>>) attributes {dimension_semantics = [#tpu.dimension_semantics<parallel>, #tpu.dimension_semantics<arbitrary>], iteration_bounds = array<i64: 1, 1>, scalar_prefetch = 0 : i64, scratch_operands = 1 : i64, tpu.core_type = #tpu.core_type<tc>, window_params = [{transform_indices = @transform_0, window_bounds = array<i64: 8, 1024>}, {transform_indices = @transform_1, window_bounds = array<i64: 8, 1024>}, {transform_indices = @transform_2, window_bounds = array<i64: 1, 1>}]} {
    %c0_i32 = arith.constant 0 : i32
    %0 = arith.cmpi eq, %arg1, %c0_i32 : i32
    %1 = arith.extui %0 : i1 to i32
    %c0_i32_0 = arith.constant 0 : i32
    %2 = arith.cmpi ne, %1, %c0_i32_0 : i32
    scf.if %2 {
      %cst = arith.constant 0.000000e+00 : f32
      %16 = vector.broadcast %cst : f32 to vector<1x1024xf32>
      %c0 = arith.constant 0 : index
      %c0_7 = arith.constant 0 : index
      %17 = vector.load %arg5[%c0, %c0_7] : memref<1x1024xf32, #tpu.memory_space<vmem>>, vector<1x1024xf32>
      tpu.vector_store %arg5[%c0, %c0_7], %16 {strides = array<i32>} : memref<1x1024xf32, #tpu.memory_space<vmem>>, vector<1x1024xf32>,
    } else {
    }
    %c1_i32 = arith.constant 1 : i32
    %3 = arith.muli %arg0, %c1_i32 : i32
    %4 = arith.addi %3, %arg1 : i32
    %c8_i32 = arith.constant 8 : i32
    %5 = arith.muli %4, %c8_i32 : i32
    %c8_i32_1 = arith.constant 8 : i32
    %6 = arith.addi %5, %c8_i32_1 : i32
    %c1_i32_2 = arith.constant 1 : i32
    %7 = arith.cmpi sle, %6, %c1_i32_2 : i32
    %8 = arith.extui %7 : i1 to i32
    %c0_i32_3 = arith.constant 0 : i32
    %9 = arith.cmpi ne, %8, %c0_i32_3 : i32
    scf.if %9 {
      %c0 = arith.constant 0 : index
      %c0_7 = arith.constant 0 : index
      %16 = vector.load %arg5[%c0, %c0_7] : memref<1x1024xf32, #tpu.memory_space<vmem>>, vector<1x1024xf32>
      %c0_8 = arith.constant 0 : index
      %c0_9 = arith.constant 0 : index
      %17 = vector.load %arg2[%c0_8, %c0_9] : memref<8x1024xf32, #tpu.memory_space<vmem>>, vector<8x1024xf32>
      %c0_10 = arith.constant 0 : index
      %c0_11 = arith.constant 0 : index
      %18 = vector.load %arg3[%c0_10, %c0_11] : memref<8x1024xf32, #tpu.memory_space<vmem>>, vector<8x1024xf32>
      %cst = arith.constant 1.000000e+00 : f32
      %cst_12 = arith.constant 1.000000e-07 : f32
      %19 = arith.subf %cst, %cst_12 : f32
      %cst_13 = arith.constant 1.000000e-07 : f32
      %20 = vector.broadcast %cst_13 : f32 to vector<8x1024xf32>
      %21 = arith.maximumf %20, %17 : vector<8x1024xf32>
      %22 = vector.broadcast %19 : f32 to vector<8x1024xf32>
      %23 = arith.minimumf %22, %21 : vector<8x1024xf32>
      %cst_14 = arith.constant 0.000000e+00 : f32
      %24 = vector.broadcast %cst_14 : f32 to vector<8x1024xf32>
      %25 = arith.subf %24, %18 : vector<8x1024xf32>
      %26 = math.log %23 : vector<8x1024xf32>
      %27 = arith.mulf %25, %26 : vector<8x1024xf32>
      %cst_15 = arith.constant 1.000000e+00 : f32
      %28 = vector.broadcast %cst_15 : f32 to vector<8x1024xf32>
      %29 = arith.subf %28, %23 : vector<8x1024xf32>
      %30 = arith.mulf %29, %29 : vector<8x1024xf32>
      %31 = arith.mulf %30, %27 : vector<8x1024xf32>
      %cst_16 = arith.constant dense<0.000000e+00> : vector<1024xf32>
      %32 = vector.multi_reduction <add>, %31, %cst_16 [0] : vector<8x1024xf32> to vector<1024xf32>
      %33 = vector.shape_cast %32 : vector<1024xf32> to vector<1x1024xf32>
      %34 = arith.addf %16, %33 : vector<1x1024xf32>
      %c0_17 = arith.constant 0 : index
      %c0_18 = arith.constant 0 : index
      %35 = vector.load %arg5[%c0_17, %c0_18] : memref<1x1024xf32, #tpu.memory_space<vmem>>, vector<1x1024xf32>
      tpu.vector_store %arg5[%c0_17, %c0_18], %34 {strides = array<i32>} : memref<1x1024xf32, #tpu.memory_space<vmem>>, vector<1x1024xf32>,
    } else {
    }
    %true = arith.constant true
    %10 = arith.xori %7, %true : i1
    %11 = arith.extui %10 : i1 to i32
    %c0_i32_4 = arith.constant 0 : i32
    %12 = arith.cmpi ne, %11, %c0_i32_4 : i32
    scf.if %12 {
      %16 = tpu.iota {dimensions = array<i32: 0>} : vector<8x1024xi32>
      %17 = vector.broadcast %5 : i32 to vector<8x1024xi32>
      %18 = arith.addi %17, %16 : vector<8x1024xi32>
      %c1_i32_7 = arith.constant 1 : i32
      %19 = vector.broadcast %c1_i32_7 : i32 to vector<8x1024xi32>
      %20 = arith.cmpi slt, %18, %19 : vector<8x1024xi32>
      %c0 = arith.constant 0 : index
      %c0_8 = arith.constant 0 : index
      %21 = vector.load %arg2[%c0, %c0_8] : memref<8x1024xf32, #tpu.memory_space<vmem>>, vector<8x1024xf32>
      %c0_9 = arith.constant 0 : index
      %c0_10 = arith.constant 0 : index
      %22 = vector.load %arg3[%c0_9, %c0_10] : memref<8x1024xf32, #tpu.memory_space<vmem>>, vector<8x1024xf32>
      %cst = arith.constant 1.000000e+00 : f32
      %cst_11 = arith.constant 1.000000e-07 : f32
      %23 = arith.subf %cst, %cst_11 : f32
      %cst_12 = arith.constant 1.000000e-07 : f32
      %24 = vector.broadcast %cst_12 : f32 to vector<8x1024xf32>
      %25 = arith.maximumf %24, %21 : vector<8x1024xf32>
      %26 = vector.broadcast %23 : f32 to vector<8x1024xf32>
      %27 = arith.minimumf %26, %25 : vector<8x1024xf32>
      %cst_13 = arith.constant 0.000000e+00 : f32
      %28 = vector.broadcast %cst_13 : f32 to vector<8x1024xf32>
      %29 = arith.subf %28, %22 : vector<8x1024xf32>
      %30 = math.log %27 : vector<8x1024xf32>
      %31 = arith.mulf %29, %30 : vector<8x1024xf32>
      %cst_14 = arith.constant 1.000000e+00 : f32
      %32 = vector.broadcast %cst_14 : f32 to vector<8x1024xf32>
      %33 = arith.subf %32, %27 : vector<8x1024xf32>
      %34 = arith.mulf %33, %33 : vector<8x1024xf32>
      %35 = arith.mulf %34, %31 : vector<8x1024xf32>
      %cst_15 = arith.constant 0.000000e+00 : f32
      %36 = vector.broadcast %cst_15 : f32 to vector<8x1024xf32>
      %37 = arith.select %20, %35, %36 : vector<8x1024xi1>, vector<8x1024xf32>
      %c0_16 = arith.constant 0 : index
      %c0_17 = arith.constant 0 : index
      %38 = vector.load %arg5[%c0_16, %c0_17] : memref<1x1024xf32, #tpu.memory_space<vmem>>, vector<1x1024xf32>
      %cst_18 = arith.constant dense<0.000000e+00> : vector<1024xf32>
      %39 = vector.multi_reduction <add>, %37, %cst_18 [0] : vector<8x1024xf32> to vector<1024xf32>
      %40 = vector.shape_cast %39 : vector<1024xf32> to vector<1x1024xf32>
      %41 = arith.addf %38, %40 : vector<1x1024xf32>
      %c0_19 = arith.constant 0 : index
      %c0_20 = arith.constant 0 : index
      %42 = vector.load %arg5[%c0_19, %c0_20] : memref<1x1024xf32, #tpu.memory_space<vmem>>, vector<1x1024xf32>
      tpu.vector_store %arg5[%c0_19, %c0_20], %41 {strides = array<i32>} : memref<1x1024xf32, #tpu.memory_space<vmem>>, vector<1x1024xf32>,
    } else {
    }
    %c0_i32_5 = arith.constant 0 : i32
    %13 = arith.cmpi eq, %arg1, %c0_i32_5 : i32
    %14 = arith.extui %13 : i1 to i32
    %c0_i32_6 = arith.constant 0 : i32
    %15 = arith.cmpi ne, %14, %c0_i32_6 : i32
    scf.if %15 {
      %16 = tpu.iota {dimensions = array<i32: 1>} : vector<1x1024xi32>
      %c1_i32_7 = arith.constant 1 : i32
      %17 = vector.broadcast %c1_i32_7 : i32 to vector<1x1024xi32>
      %18 = arith.andi %16, %17 : vector<1x1024xi32>
      %c0_i32_8 = arith.constant 0 : i32
      %19 = vector.broadcast %c0_i32_8 : i32 to vector<1x1024xi32>
      %20 = arith.cmpi eq, %18, %19 : vector<1x1024xi32>
      %cst = arith.constant 3.000000e-01 : f32
      %cst_9 = arith.constant 0.699999988 : f32
      %21 = vector.broadcast %cst : f32 to vector<1x1024xf32>
      %22 = vector.broadcast %cst_9 : f32 to vector<1x1024xf32>
      %23 = arith.select %20, %21, %22 : vector<1x1024xi1>, vector<1x1024xf32>
      %c0 = arith.constant 0 : index
      %c0_10 = arith.constant 0 : index
      %24 = vector.load %arg5[%c0, %c0_10] : memref<1x1024xf32, #tpu.memory_space<vmem>>, vector<1x1024xf32>
      %25 = arith.mulf %23, %24 : vector<1x1024xf32>
      %26 = vector.shape_cast %25 : vector<1x1024xf32> to vector<1x1x1024xf32>
      %cst_11 = arith.constant dense<0.000000e+00> : vector<1xf32>
      %27 = vector.multi_reduction <add>, %26, %cst_11 [1, 2] : vector<1x1x1024xf32> to vector<1xf32>
      %28 = vector.shape_cast %27 : vector<1xf32> to vector<1x1x1xf32>
      %29 = vector.extract %28[0, 0, 0] : f32 from vector<1x1x1xf32>
      %c0_12 = arith.constant 0 : index
      %c0_13 = arith.constant 0 : index
      %30 = memref.load %arg4[%c0_12, %c0_13] : memref<1x1xf32, #tpu.memory_space<smem>>
      memref.store %29, %arg4[%c0_12, %c0_13] : memref<1x1xf32, #tpu.memory_space<smem>>
    } else {
    }
    return
  }
  func.func @transform_0(%arg0: i32, %arg1: i32) -> (i32, i32) {
    %c1_i32 = arith.constant 1 : i32
    %0 = arith.muli %arg0, %c1_i32 : i32
    %1 = arith.addi %0, %arg1 : i32
    %c0_i32 = arith.constant 0 : i32
    %2 = arith.minsi %1, %c0_i32 : i32
    %c0_i32_0 = arith.constant 0 : i32
    %c0_i32_1 = arith.constant 0 : i32
    return %2, %c0_i32_0 : i32, i32
  }
  func.func @transform_1(%arg0: i32, %arg1: i32) -> (i32, i32) {
    %c1_i32 = arith.constant 1 : i32
    %0 = arith.muli %arg0, %c1_i32 : i32
    %1 = arith.addi %0, %arg1 : i32
    %c0_i32 = arith.constant 0 : i32
    %2 = arith.minsi %1, %c0_i32 : i32
    %c0_i32_0 = arith.constant 0 : i32
    %c0_i32_1 = arith.constant 0 : i32
    return %2, %c0_i32_0 : i32, i32
  }
  func.func @transform_2(%arg0: i32, %arg1: i32) -> (i32, i32) {
    %c0_i32 = arith.constant 0 : i32
    %c0_i32_0 = arith.constant 0 : i32
    return %arg0, %c0_i32 : i32, i32
  }
}

</mosaic_0001>

<bundles_post_ra>
// kernel: tpu_custom_call.1
= control target key start
LH: loop header
LB: loop body
LE: loop exit
PB: predicated region body
PF: predicated region fallthrough
CT: control target
= control target key end

     0   :  { %7 = vsyncpa [#allocation4], 0  ;;  %s1210_s0 = inlined_call_operand.hbm [shape: f32[1,1024], index: 0, kind: input, shape index: {}]   ;;  %s1211_s1 = inlined_call_operand.hbm [shape: f32[1,1024], index: 1, kind: input, shape index: {}]   ;;  %s1212_s2 = inlined_call_operand.hbm [shape: f32[1,1], index: 2, kind: output, shape index: {}]  }
   0x1   :  { %8 = vsyncpa [#allocation7], 0 }
   0x2   :  { %9 = vsyncpa [#allocation5], 0 }
   0x3   :  { %21 = vsyncadd [#allocation4], 896  ;;  %s1022_s9 = smov [#allocation3]   ;;  %s962_s13 = scalar_lea.hbm %s1210_s0, 128 }
   0x4   :  { %s27_s10 = sshll.u32 %s1022_s9, 4  ;;  %p963_p0 = scmp.ne.s32.totalorder %s1210_s0, %s962_s13  ;;  %s28_s10 = int_to_ptr.vmem [resolvable:$true] %s27_s10 }
   0x5   :  { %p966_p1 = scmp.lt.u32.totalorder %s962_s13, %s1210_s0 }
   0x7   :  { %p968_p2 = pnand %p966_p1, %p963_p0 }
   0x9   :  { %971 = shalt.err (!%p968_p2)
}
   0xa   :  { %s972_s18 = scalar_lea.vmem %s28_s10, 128  ;;  %s976_s19 = scalar_lea.vmem %s28_s10, 1024 }
   0xb   :  { %p973_p3 = scmp.ne.s32.totalorder %s28_s10, %s972_s18  ;;  %p977_p4 = scmp.lt.s32.totalorder %s28_s10, %s28_s10 }
   0xc   :  { %p978_p5 = scmp.lt.s32.totalorder %s976_s19, %s972_s18 }
   0xe   :  { %p979_p6 = por %p978_p5, %p977_p4 }
  0x10   :  { %p980_p7 = pnand %p979_p6, %p973_p3 }
  0x12   :  { %983 = shalt.err (!%p980_p7)
}
  0x13   :  { %s1023_s20 = smov 128   ;;  %s1024_s21 = smov 8  }
  0x14   :  { %33 = dma.hbm_to_vmem [thread:$0]  %s1210_s0, 128, %s28_s10, [#allocation4], %s1023_s20, %s1023_s20, %s1024_s21  }
  0x15   :  { %45 = vsyncadd [#allocation7], 896  ;;  %s1025_s24 = smov [#allocation6]   ;;  %s984_s28 = scalar_lea.hbm %s1211_s1, 128 }
  0x16   :  { %s51_s25 = sshll.u32 %s1025_s24, 4  ;;  %p985_p8 = scmp.ne.s32.totalorder %s1211_s1, %s984_s28  ;;  %s52_s25 = int_to_ptr.vmem [resolvable:$true] %s51_s25 }
  0x17   :  { %p988_p9 = scmp.lt.u32.totalorder %s984_s28, %s1211_s1 }
  0x19   :  { %p990_p10 = pnand %p988_p9, %p985_p8 }
  0x1b   :  { %993 = shalt.err (!%p990_p10)
}
  0x1c   :  { %s994_s5 = scalar_lea.vmem %s52_s25, 128  ;;  %s998_s0 = scalar_lea.vmem %s52_s25, 1024 }
  0x1d   :  { %p995_p11 = scmp.ne.s32.totalorder %s52_s25, %s994_s5  ;;  %p999_p12 = scmp.lt.s32.totalorder %s52_s25, %s52_s25 }
  0x1e   :  { %p1000_p13 = scmp.lt.s32.totalorder %s998_s0, %s994_s5 }
  0x20   :  { %p1001_p0 = por %p1000_p13, %p999_p12 }
  0x22   :  { %p1002_p1 = pnand %p1001_p0, %p995_p11 }
  0x24   :  { %1005 = shalt.err (!%p1002_p1)
}
  0x25   :  { %57 = dma.hbm_to_vmem [thread:$0]  %s1211_s1, 128, %s52_s25, [#allocation7], %s1023_s20, %s1023_s20, %s1024_s21  }
  0x26   :  { %1016 = dma.done.wait [#allocation4], 1024  }
  0x27   :  { %1017 = vsyncadd [#allocation4], 4294966272 }
  0x28   :  { %1018 = dma.done.wait [#allocation7], 1024  }
  0x29   :  { %1019 = vsyncadd [#allocation7], 4294966272  ;;  %v448_v0 = vld [vmem:[#allocation3] sm:$0xff]  ;;  %v449_v1 = vld [vmem:[#allocation3 + $0x8] sm:$0xff]  ;;  %v443_v20 = vlaneseq  ;;  %v1026_v22 = vmov 1966171168  }
  0x2a   :  { %v450_v2 = vld [vmem:[#allocation3 + $0x10] sm:$0xff]  ;;  %v451_v3 = vld [vmem:[#allocation3 + $0x18] sm:$0xff]  ;;  %v452_v4 = vld [vmem:[#allocation3 + $0x20] sm:$0xff]  ;;  %v464_v5 = vmax.f32 %v448_v0, 1e-07  ;;  %v553_v23 = vunpack.c.l.s4 %v1026_v22  ;;  %vm891_vm1 = vcmask 1040384  }
  0x2b   :  { %v453_v6 = vld [vmem:[#allocation3 + $0x28] sm:$0xff]  ;;  %v465_v7 = vmax.f32 %v449_v1, 1e-07  ;;  %v466_v8 = vmax.f32 %v450_v2, 1e-07  ;;  %v454_v9 = vld [vmem:[#allocation3 + $0x30] sm:$0xff] }
  0x2c   :  { %v467_v10 = vmax.f32 %v451_v3, 1e-07  ;;  %v455_v11 = vld [vmem:[#allocation3 + $0x38] sm:$0xff]  ;;  %v468_v12 = vmax.f32 %v452_v4, 1e-07  ;;  %v1071_v27 = vshrl.u32 %v443_v20, 7  ;;  %v554_v28 = vunpack.c.0.s8 %v553_v23 }
  0x2d   :  { %v469_v13 = vmax.f32 %v453_v6, 1e-07  ;;  %v472_v14 = vmin.f32 %v464_v5, 0.9999999  ;;  %v470_v15 = vmax.f32 %v454_v9, 1e-07 }
  0x2e   :  { %v473_v16 = vmin.f32 %v465_v7, 0.9999999  ;;  %v474_v17 = vmin.f32 %v466_v8, 0.9999999  ;;  %v471_v18 = vmax.f32 %v455_v11, 1e-07  ;;  %v1075_v39 = vsub.s32 %v554_v28, %v1071_v27 }
  0x2f   :  { %v475_v19 = vmin.f32 %v467_v10, 0.9999999  ;;  %946 = vlog2.f32 %v472_v14  ;;  %v476_v21 = vmin.f32 %v468_v12, 0.9999999  ;;  %v477_v24 = vmin.f32 %v469_v13, 0.9999999 }
  0x30   :  { %948 = vlog2.f32 %v473_v16  ;;  %v478_v25 = vmin.f32 %v470_v15, 0.9999999  ;;  %v1068_v26 = vmin.f32 %v471_v18, 0.9999999  ;;  %v456_v29 = vld [vmem:[#allocation6] sm:$0xff]  ;;  %v457_v30 = vld [vmem:[#allocation6 + $0x8] sm:$0xff] }
  0x31   :  { %950 = vlog2.f32 %v474_v17  ;;  %v458_v31 = vld [vmem:[#allocation6 + $0x10] sm:$0xff]  ;;  %v459_v32 = vld [vmem:[#allocation6 + $0x18] sm:$0xff]  ;;  %v512_v33 = vsub.f32 1.0, %v472_v14  ;;  %v460_v34 = vld [vmem:[#allocation6 + $0x20] sm:$0xff]  ;;  %v480_v37 = vsub.f32 0.0, %v456_v29  ;;  %v513_v38 = vsub.f32 1.0, %v473_v16 }
  0x32   :  { %952 = vlog2.f32 %v475_v19  ;;  %v461_v35 = vld [vmem:[#allocation6 + $0x28] sm:$0xff]  ;;  %v462_v36 = vld [vmem:[#allocation6 + $0x30] sm:$0xff]  ;;  %v481_v41 = vsub.f32 0.0, %v457_v30  ;;  %v482_v42 = vsub.f32 0.0, %v458_v31  ;;  %v483_v43 = vsub.f32 0.0, %v459_v32  ;;  %v463_v45 = vld [vmem:[#allocation6 + $0x38] sm:$0xff] }
  0x33   :  { %954 = vlog2.f32 %v476_v21  ;;  %v514_v44 = vsub.f32 1.0, %v474_v17  ;;  %v484_v46 = vsub.f32 0.0, %v460_v34  ;;  %v515_v48 = vsub.f32 1.0, %v475_v19  ;;  %s1006_s10 = scalar_lea.hbm %s1212_s2, 16 }
  0x34   :  { %956 = vlog2.f32 %v477_v24  ;;  %v520_v49 = vmul.f32 %v512_v33, %v512_v33  ;;  %v485_v51 = vsub.f32 0.0, %v461_v35  ;;  %v486_v52 = vsub.f32 0.0, %v462_v36  ;;  %p1007_p2 = scmp.ne.s32.totalorder %s1212_s2, %s1006_s10  ;;  %p1010_p3 = scmp.lt.u32.totalorder %s1006_s10, %s1212_s2 }
  0x35   :  { %958 = vlog2.f32 %v478_v25  ;;  %v516_v53 = vsub.f32 1.0, %v476_v21  ;;  %v517_v54 = vsub.f32 1.0, %v477_v24  ;;  %v518_v58 = vsub.f32 1.0, %v478_v25 }
  0x36   :  { %960 = vlog2.f32 %v1068_v26  ;;  %v521_v59 = vmul.f32 %v513_v38, %v513_v38  ;;  %v487_v61 = vsub.f32 0.0, %v463_v45  ;;  %v519_v63 = vsub.f32 1.0, %v1068_v26  ;;  %p1012_p4 = pnand %p1010_p3, %p1007_p2 }
  0x37   :  { %v522_v0 = vmul.f32 %v514_v44, %v514_v44  ;;  %v523_v4 = vmul.f32 %v515_v48, %v515_v48  ;;  %v524_v9 = vmul.f32 %v516_v53, %v516_v53  ;;  %v525_v10 = vmul.f32 %v517_v54, %v517_v54 }
  0x38   :  { %v526_v14 = vmul.f32 %v518_v58, %v518_v58  ;;  %v527_v19 = vmul.f32 %v519_v63, %v519_v63  ;;  %vm447_vm0 = vcmp.lt.s32.totalorder %v1071_v27, 1 }
  0x39   :  { %v947_v40 = vpop.eup %946 }
  0x3a   :  { %v489_v47 = vmul.f32 0.6931472, %v947_v40  ;;  %v949_v50 = vpop.eup %948 }
  0x3b   :  { %v951_v55 = vpop.eup %950  ;;  %v491_v56 = vmul.f32 0.6931472, %v949_v50 }
  0x3c   :  { %v504_v57 = vmul.f32 %v489_v47, %v480_v37  ;;  %v953_v60 = vpop.eup %952  ;;  %v493_v62 = vmul.f32 0.6931472, %v951_v55  ;;  %v1089_v55 = vand.u32 127, %v443_v20 }
  0x3d   :  { %v955_v1 = vpop.eup %954  ;;  %v495_v2 = vmul.f32 0.6931472, %v953_v60  ;;  %v505_v3 = vmul.f32 %v491_v56, %v481_v41 }
  0x3e   :  { %v528_v5 = vmul.f32 %v520_v49, %v504_v57  ;;  %v957_v6 = vpop.eup %956  ;;  %v497_v7 = vmul.f32 0.6931472, %v955_v1  ;;  %v506_v8 = vmul.f32 %v493_v62, %v482_v42  ;;  %v1099_v20 = vadd.s32 128, %v1089_v55 }
  0x3f   :  { %v959_v11 = vpop.eup %958  ;;  %v499_v12 = vmul.f32 0.6931472, %v957_v6  ;;  %v507_v13 = vmul.f32 %v495_v2, %v483_v43  ;;  %v529_v15 = vmul.f32 %v521_v59, %v505_v3  ;;  %v1102_v2 = vadd.s32 256, %v1089_v55 }
  0x40   :  { %v961_v16 = vpop.eup %960  ;;  %v501_v17 = vmul.f32 0.6931472, %v959_v11  ;;  %v508_v18 = vmul.f32 %v497_v7, %v484_v46  ;;  %v530_v21 = vmul.f32 %v522_v0, %v506_v8  ;;  %v1105_v3 = vadd.s32 384, %v1089_v55 }
  0x41   :  { %v503_v22 = vmul.f32 0.6931472, %v961_v16  ;;  %v509_v23 = vmul.f32 %v499_v12, %v485_v51  ;;  %v531_v24 = vmul.f32 %v523_v4, %v507_v13  ;;  %v544_v25 = vcombine.low %v528_v5, %v529_v15 }
  0x42   :  { %v510_v26 = vmul.f32 %v501_v17, %v486_v52  ;;  %v532_v28 = vmul.f32 %v524_v9, %v508_v18  ;;  %v545_v29 = vcombine.high %v528_v5, %v529_v15  ;;  %v1108_v4 = vadd.s32 512, %v1089_v55 }
  0x43   :  { %v511_v30 = vmul.f32 %v503_v22, %v487_v61  ;;  %v533_v31 = vmul.f32 %v525_v10, %v509_v23  ;;  %v546_v32 = vcombine.low %v530_v21, %v531_v24  ;;  %v547_v33 = vcombine.high %v530_v21, %v531_v24 }
  0x44   :  { %v534_v34 = vmul.f32 %v526_v14, %v510_v26  ;;  %v558_v35 = vrot.slane %v544_v25, %v1075_v39  ;;  %v565_v36 = vrot.slane %v545_v29, %v1075_v39 }
  0x45   :  { %v535_v37 = vmul.f32 %v527_v19, %v511_v30  ;;  %v548_v38 = vcombine.low %v532_v28, %v533_v31  ;;  %v549_v40 = vcombine.high %v532_v28, %v533_v31  ;;  %v572_v41 = vrot.slane %v546_v32, %v1075_v39 }
  0x46   :  { %v579_v42 = vrot.slane %v547_v33, %v1075_v39 }
  0x47   :  { %v550_v43 = vcombine.low %v534_v34, %v535_v37  ;;  %v551_v44 = vcombine.high %v534_v34, %v535_v37  ;;  %v586_v45 = vrot.slane %v548_v38, %v1075_v39  ;;  %v593_v46 = vrot.slane %v549_v40, %v1075_v39 }
  0x48   :  { %v608_v47 = vcombine.low %v558_v35, %v572_v41  ;;  %v609_v48 = vcombine.high %v558_v35, %v572_v41  ;;  %v610_v49 = vcombine.low %v565_v36, %v579_v42  ;;  %v611_v50 = vcombine.high %v565_v36, %v579_v42 }
  0x49   :  { %v600_v51 = vrot.slane %v550_v43, %v1075_v39  ;;  %v607_v52 = vrot.slane %v551_v44, %v1075_v39 }
  0x4a   :  { %v622_v53 = vrot.slane %v608_v47, %v1075_v39  ;;  %v629_v54 = vrot.slane %v610_v49, %v1075_v39  ;;  %v636_v60 = vrot.slane %v609_v48, %v1075_v39  ;;  %v643_v61 = vrot.slane %v611_v50, %v1075_v39 }
  0x4b   :  { %v612_v56 = vcombine.low %v586_v45, %v600_v51  ;;  %v613_v57 = vcombine.high %v586_v45, %v600_v51  ;;  %v614_v58 = vcombine.low %v593_v46, %v607_v52  ;;  %v615_v59 = vcombine.high %v593_v46, %v607_v52 }
  0x4d   :  { %v650_v62 = vrot.slane %v612_v56, %v1075_v39  ;;  %v657_v63 = vrot.slane %v614_v58, %v1075_v39  ;;  %v664_v0 = vrot.slane %v613_v57, %v1075_v39  ;;  %v671_v1 = vrot.slane %v615_v59, %v1075_v39 }
  0x4f   :  { %v672_v5 = vcombine.low %v622_v53, %v650_v62  ;;  %v673_v6 = vcombine.high %v622_v53, %v650_v62  ;;  %v674_v7 = vcombine.low %v629_v54, %v657_v63  ;;  %v675_v8 = vcombine.high %v629_v54, %v657_v63 }
  0x50   :  { %v676_v9 = vcombine.low %v636_v60, %v664_v0  ;;  %v677_v10 = vcombine.high %v636_v60, %v664_v0  ;;  %v678_v11 = vcombine.low %v643_v61, %v671_v1  ;;  %v679_v12 = vcombine.high %v643_v61, %v671_v1 }
  0x51   :  { %v688_v13 = vsel %vm447_vm0, %v672_v5, 0.0  ;;  %v690_v14 = vsel %vm447_vm0, %v673_v6, 0.0  ;;  %v692_v15 = vsel %vm447_vm0, %v674_v7, 0.0  ;;  %v694_v16 = vsel %vm447_vm0, %v675_v8, 0.0 }
  0x52   :  { %v689_v17 = vsel %vm447_vm0, %v676_v9, 0.0  ;;  %v691_v18 = vsel %vm447_vm0, %v677_v10, 0.0  ;;  %v693_v19 = vsel %vm447_vm0, %v678_v11, 0.0  ;;  %v695_v21 = vsel %vm447_vm0, %v679_v12, 0.0 }
  0x53   :  { %v697_v22 = vrot.slane %v688_v13, 4  ;;  %v703_v23 = vrot.slane %v689_v17, 4  ;;  %v709_v24 = vrot.slane %v690_v14, 4  ;;  %v715_v25 = vrot.slane %v691_v18, 4 }
  0x54   :  { %v721_v26 = vrot.slane %v692_v15, 4  ;;  %v727_v28 = vrot.slane %v693_v19, 4  ;;  %v733_v29 = vrot.slane %v694_v16, 4  ;;  %v739_v30 = vrot.slane %v695_v21, 4 }
  0x55   :  { %v698_v31 = vadd.f32 %v697_v22, %v688_v13  ;;  %v704_v32 = vadd.f32 %v703_v23, %v689_v17  ;;  %v710_v33 = vadd.f32 %v709_v24, %v690_v14  ;;  %v716_v34 = vadd.f32 %v715_v25, %v691_v18 }
  0x56   :  { %v722_v35 = vadd.f32 %v721_v26, %v692_v15  ;;  %v728_v36 = vadd.f32 %v727_v28, %v693_v19  ;;  %v734_v37 = vadd.f32 %v733_v29, %v694_v16  ;;  %v740_v38 = vadd.f32 %v739_v30, %v695_v21 }
  0x57   :  { %v699_v40 = vrot.slane %v698_v31, 2  ;;  %v705_v41 = vrot.slane %v704_v32, 2  ;;  %v711_v42 = vrot.slane %v710_v33, 2  ;;  %v717_v43 = vrot.slane %v716_v34, 2 }
  0x58   :  { %v723_v44 = vrot.slane %v722_v35, 2  ;;  %v729_v45 = vrot.slane %v728_v36, 2  ;;  %v735_v46 = vrot.slane %v734_v37, 2  ;;  %v741_v47 = vrot.slane %v740_v38, 2 }
  0x59   :  { %v700_v48 = vadd.f32 %v699_v40, %v698_v31  ;;  %v706_v49 = vadd.f32 %v705_v41, %v704_v32  ;;  %v712_v50 = vadd.f32 %v711_v42, %v710_v33  ;;  %v718_v51 = vadd.f32 %v717_v43, %v716_v34 }
  0x5a   :  { %v724_v52 = vadd.f32 %v723_v44, %v722_v35  ;;  %v730_v53 = vadd.f32 %v729_v45, %v728_v36  ;;  %v736_v54 = vadd.f32 %v735_v46, %v734_v37  ;;  %v742_v56 = vadd.f32 %v741_v47, %v740_v38 }
  0x5b   :  { %v701_v57 = vrot.slane %v700_v48, 1  ;;  %v707_v58 = vrot.slane %v706_v49, 1  ;;  %v713_v59 = vrot.slane %v712_v50, 1  ;;  %v719_v60 = vrot.slane %v718_v51, 1 }
  0x5c   :  { %v725_v61 = vrot.slane %v724_v52, 1  ;;  %v731_v62 = vrot.slane %v730_v53, 1  ;;  %v737_v63 = vrot.slane %v736_v54, 1  ;;  %v743_v0 = vrot.slane %v742_v56, 1 }
  0x5d   :  { %v702_v1 = vadd.f32 %v701_v57, %v700_v48  ;;  %v708_v5 = vadd.f32 %v707_v58, %v706_v49  ;;  %v714_v6 = vadd.f32 %v713_v59, %v712_v50  ;;  %v720_v7 = vadd.f32 %v719_v60, %v718_v51 }
  0x5e   :  { %v726_v8 = vadd.f32 %v725_v61, %v724_v52  ;;  %v732_v9 = vadd.f32 %v731_v62, %v730_v53  ;;  %v738_v10 = vadd.f32 %v737_v63, %v736_v54  ;;  %v744_v11 = vadd.f32 %v743_v0, %v742_v56 }
  0x5f   :  { %v753_v12 = vcombine.low %v702_v1, %v708_v5  ;;  %v754_v13 = vcombine.low %v714_v6, %v720_v7  ;;  %v814_v14 = vadd.s32 640, %v1089_v55  ;;  %v815_v15 = vadd.s32 768, %v1089_v55 }
  0x60   :  { %v755_v16 = vcombine.low %v726_v8, %v732_v9  ;;  %v756_v17 = vcombine.low %v738_v10, %v744_v11  ;;  %v817_v18 = vand.u32 1, %v1089_v55  ;;  %v818_v19 = vand.u32 1, %v1099_v20 }
  0x61   :  { %v763_v21 = vrot.slane %v753_v12, %v1075_v39  ;;  %v770_v22 = vrot.slane %v754_v13, %v1075_v39  ;;  %v819_v23 = vand.u32 1, %v1102_v2  ;;  %v820_v24 = vand.u32 1, %v1105_v3 }
  0x62   :  { %v777_v25 = vrot.slane %v755_v16, %v1075_v39  ;;  %v784_v26 = vrot.slane %v756_v17, %v1075_v39  ;;  %v816_v29 = vadd.s32 896, %v1089_v55  ;;  %v821_v30 = vand.u32 1, %v1108_v4 }
  0x63   :  { %v785_v28 = vcombine.low %v763_v21, %v770_v22  ;;  %v822_v31 = vand.u32 1, %v814_v14  ;;  %v823_v32 = vand.u32 1, %v815_v15  ;;  %vm1138_vm2 = vcmp.eq.s32.totalorder %v817_v18, 0 }
  0x64   :  { %v786_v20 = vcombine.low %v777_v25, %v784_v26  ;;  %vm1142_vm3 = vcmp.eq.s32.totalorder %v818_v19, 0  ;;  %vm1147_vm4 = vcmp.eq.s32.totalorder %v819_v23, 0  ;;  %vm1151_vm5 = vcmp.eq.s32.totalorder %v820_v24, 0 }
  0x65   :  { %v793_v3 = vrot.slane %v785_v28, %v1075_v39  ;;  %v845_v4 = vsub.s32 0, %v1071_v27  ;;  %v849_v36 = vsub.s32 1, %v1071_v27  ;;  %v853_v37 = vsub.s32 2, %v1071_v27 }
  0x66   :  { %v800_v35 = vrot.slane %v786_v20, %v1075_v39  ;;  %v857_v38 = vsub.s32 3, %v1071_v27  ;;  %v824_v40 = vand.u32 1, %v816_v29  ;;  %vm1160_vm6 = vcmp.eq.s32.totalorder %v821_v30, 0 }
  0x67   :  { %v861_v42 = vsub.s32 4, %v1071_v27  ;;  %v865_v43 = vsub.s32 5, %v1071_v27  ;;  %vm1166_vm7 = vcmp.eq.s32.totalorder %v822_v31, 0  ;;  %v1027_v39 = vmov 0.7  }
  0x68   :  { %v801_v44 = vcombine.low %v793_v3, %v800_v35  ;;  %v833_v46 = vsel %vm1138_vm2, 0.3, %v1027_v39  ;;  %v834_v47 = vsel %vm1142_vm3, 0.3, %v1027_v39  ;;  %vm1174_vm8 = vcmp.eq.s32.totalorder %v823_v32, 0 }
  0x69   :  { %v835_v49 = vsel %vm1147_vm4, 0.3, %v1027_v39  ;;  %v836_v50 = vsel %vm1151_vm5, 0.3, %v1027_v39  ;;  %v869_v51 = vsub.s32 6, %v1071_v27  ;;  %v873_v60 = vsub.s32 7, %v1071_v27 }
  0x6a   :  { %v846_v52 = vrot.slane %v801_v44, %v845_v4  ;;  %v850_v53 = vrot.slane %v801_v44, %v849_v36  ;;  %v854_v54 = vrot.slane %v801_v44, %v853_v37  ;;  %v858_v56 = vrot.slane %v801_v44, %v857_v38 }
  0x6b   :  { %v837_v57 = vsel %vm1160_vm6, 0.3, %v1027_v39  ;;  %v862_v58 = vrot.slane %v801_v44, %v861_v42  ;;  %v866_v59 = vrot.slane %v801_v44, %v865_v43  ;;  %vm832_vm9 = vcmp.eq.s32.totalorder %v824_v40, 0 }
  0x6c   :  { %v883_v61 = vmul.f32 %v846_v52, %v833_v46  ;;  %v884_v62 = vmul.f32 %v850_v53, %v834_v47  ;;  %v885_v63 = vmul.f32 %v854_v54, %v835_v49  ;;  %v886_v0 = vmul.f32 %v858_v56, %v836_v50 }
  0x6d   :  { %v838_v1 = vsel %vm1166_vm7, 0.3, %v1027_v39  ;;  %v870_v5 = vrot.slane %v801_v44, %v869_v51  ;;  %v887_v6 = vmul.f32 %v862_v58, %v837_v57  ;;  %v839_v10 = vsel %vm1174_vm8, 0.3, %v1027_v39 }
  0x6e   :  { %v892_v7 = vsel %vm891_vm1, %v883_v61, 0.0  ;;  %v893_v8 = vsel %vm891_vm1, %v884_v62, 0.0  ;;  %v895_v9 = vsel %vm891_vm1, %v885_v63, 0.0  ;;  %v874_v11 = vrot.slane %v801_v44, %v873_v60 }
  0x6f   :  { %v894_v27 = vadd.f32 %v893_v8, %v892_v7  ;;  %v888_v12 = vmul.f32 %v866_v59, %v838_v1  ;;  %v897_v13 = vsel %vm891_vm1, %v886_v0, 0.0  ;;  %v840_v14 = vsel %vm832_vm9, 0.3, %v1027_v39 }
  0x70   :  { %v889_v16 = vmul.f32 %v870_v5, %v839_v10  ;;  %v899_v17 = vsel %vm891_vm1, %v887_v6, 0.0  ;;  %v890_v19 = vmul.f32 %v874_v11, %v840_v14 }
  0x71   :  { %v896_v15 = vadd.f32 %v895_v9, %v894_v27  ;;  %v901_v21 = vsel %vm891_vm1, %v888_v12, 0.0 }
  0x72   :  { %v903_v23 = vsel %vm891_vm1, %v889_v16, 0.0  ;;  %v905_v25 = vsel %vm891_vm1, %v890_v19, 0.0 }
  0x73   :  { %v898_v18 = vadd.f32 %v897_v13, %v896_v15 }
  0x75   :  { %v900_v22 = vadd.f32 %v899_v17, %v898_v18 }
  0x77   :  { %v902_v24 = vadd.f32 %v901_v21, %v900_v22 }
  0x79   :  { %v904_v26 = vadd.f32 %v903_v23, %v902_v24 }
  0x7b   :  { %v906_v28 = vadd.f32 %v905_v25, %v904_v26 }
  0x7d   :  { %907 = vadd.xlane.f32.xlu0 %v906_v28 }
 0x10a   :  { %v908_v29 = vpop.xlane.xlu0 %907 }
 0x10b   :  { %v909_v30 = vrot.slane %v908_v29, 4 }
 0x10d   :  { %v910_v31 = vadd.f32 %v909_v30, %v908_v29 }
 0x10f   :  { %v911_v20 = vrot.slane %v910_v31, 2 }
 0x111   :  { %v912_v32 = vadd.f32 %v911_v20, %v910_v31 }
 0x113   :  { %v913_v33 = vrot.slane %v912_v32, 1 }
 0x115   :  { %v914_v2 = vadd.f32 %v913_v33, %v912_v32 }
 0x117   :  { %937 = vpush %v914_v2 }
 0x148   :  { %s938_s1 = spop %937 }
 0x149   :  { %917 = sst [smem:[#allocation8]] %s938_s1 }
 0x14a   :  { %1015 = shalt.err (!%p1012_p4)
}
 0x14b   :  { %s1028_s15 = smov [#allocation8]  }
 0x14c   :  { %925 = dma.smem_to_hbm %s1028_s15, 16, %s1212_s2, [#allocation5]  }
 0x14d   :  { %1020 = dma.done.wait [#allocation5], 16  }
 0x14e   :  { %1021 = vsyncadd [#allocation5], 4294967280 }
 0x14f   :  { %929 = sfence }
 0x150   :  { %930 = vsyncpa [#allocation4], 1 }
 0x151   :  { %931 = vsyncpa [#allocation7], 1 }
 0x152   :  { %932 = vsyncpa [#allocation5], 1 }

</bundles_post_ra>
